<compile_context>
chip_gen: v7x
topology: tpu7x:2x2x1
jax: 0.10.0
libtpu: 0.0.40
codegen_flags: <defaults>
</compile_context>

<pallas_src>
import functools

import jax
import jax.numpy as jnp
from jax.experimental import pallas as pl
from jax.experimental.pallas import tpu as pltpu


def _triplet_kernel(x_ref, out_ref, *, margin, embed_dim, total_rows,
                    rows_block, needs_mask):
    """One grid step: fused (ROWS_B, 3*D) row tile -> one partial-sum slab.

    x_ref   : (ROWS_B, 3*D) fused [anchor | positive | negative] rows
    out_ref : (1, 8, 128)   per-block partial sum (scalar broadcast, lane-dense)
    """
    d = embed_dim

    # Slice first, then upcast only the operands we use (no full-tile f32 copy).
    # NOTE: for D % 128 != 0 these lane slices cost a few XLU relayouts, but the
    # kernel stays HBM-read bound, so it does not flip the regime.
    anchor = x_ref[:, 0:d].astype(jnp.float32)
    positive = x_ref[:, d:2 * d].astype(jnp.float32)
    negative = x_ref[:, 2 * d:3 * d].astype(jnp.float32)

    dp = anchor - positive
    dn = anchor - negative
    # pos_dist - neg_dist == sum_D[(a-p)^2 - (a-n)^2]
    diff = jnp.sum(dp * dp - dn * dn, axis=-1, keepdims=True)   # (ROWS_B, 1)
    loss = jnp.maximum(diff + margin, 0.0)                      # hinge

    def write(val):
        out_ref[...] = jnp.full(out_ref.shape, val, dtype=out_ref.dtype)

    if needs_mask:
        last = pl.num_programs(0) - 1

        @pl.when(pl.program_id(0) != last)
        def _():
            write(jnp.sum(loss))

        @pl.when(pl.program_id(0) == last)
        def _():
            # Mask rows past T*N in the ragged final block (also zeroes any
            # garbage/NaN from the over-read tail of the input tile).
            row = jax.lax.broadcasted_iota(jnp.int32, loss.shape, 0)
            valid = (pl.program_id(0) * rows_block + row) < total_rows
            write(jnp.sum(jnp.where(valid, loss, 0.0)))
    else:
        write(jnp.sum(loss))


def triplet_loss(embeddings: jax.Array, margin: float = 0.2) -> jax.Array:
    """Pallas implementation of TripletLoss.forward.

    embeddings: (T, B, D) with B % 3 == 0. Returns scalar float32 loss.
    """
    T, B, D = embeddings.shape
    assert B % 3 == 0, "Batch size must be divisible by 3 for triplets"
    N = B // 3
    total_rows = T * N

    # Free, contiguous reshape: one fused 2-D row stream, sublane-dense for any N.
    x = embeddings.reshape(total_rows, 3 * D)

    itemsize = jnp.dtype(embeddings.dtype).itemsize
    bytes_per_row_in = 3 * D * itemsize
    bytes_per_row_f32 = 3 * D * 4

    # HBM-read bound: target ~8 MiB of f32 input (~4 MiB for narrower dtypes,
    # whose f32 working set is 2x the input bytes) per grid step.
    target_bytes = (8 << 20) if itemsize >= 4 else (4 << 20)
    rows_block = max(8, target_bytes // max(bytes_per_row_in, 1))

    # Honest VMEM clamp: 2x input tile (double buffer) + ~3x f32 working set
    # must fit in ~40 MiB (leaves headroom on v7x's 64 MiB physical VMEM).
    max_rows_vmem = max(8, (40 << 20) //
                        (2 * bytes_per_row_in + 3 * bytes_per_row_f32))
    rows_block = min(rows_block, max_rows_vmem)

    # Keep >= 2 grid blocks when there is enough work (v7x: 2 TensorCores).
    if total_rows > 8:
        rows_block = min(rows_block, pl.cdiv(total_rows, 2))
    rows_block = min(rows_block, total_rows)
    if rows_block < total_rows:
        rows_block = max(8, (rows_block // 8) * 8)   # sublane-dense blocks

    n_blocks = pl.cdiv(total_rows, rows_block)
    needs_mask = (total_rows % rows_block) != 0

    # VMEM budget: double-buffered input + f32 intermediates + slack, <= 48 MiB.
    tile_in = rows_block * bytes_per_row_in
    tile_f32 = rows_block * bytes_per_row_f32
    vmem_needed = 2 * tile_in + 3 * tile_f32 + (2 << 20)
    vmem_limit = int(min(48 << 20, max(32 << 20, vmem_needed)))

    kernel = functools.partial(
        _triplet_kernel, margin=float(margin), embed_dim=D,
        total_rows=total_rows, rows_block=rows_block, needs_mask=needs_mask)

    partials = pl.pallas_call(
        kernel,
        out_shape=jax.ShapeDtypeStruct((n_blocks, 8, 128), jnp.float32),
        grid_spec=pltpu.PrefetchScalarGridSpec(
            num_scalar_prefetch=0,
            grid=(n_blocks,),
            in_specs=[pl.BlockSpec((rows_block, 3 * D), lambda r: (r, 0))],
            out_specs=pl.BlockSpec((1, 8, 128), lambda r: (r, 0, 0)),
        ),
        compiler_params=pltpu.CompilerParams(
            dimension_semantics=("parallel",),
            vmem_limit_bytes=vmem_limit,
        ),
    )(x)

    # Tiny final reduction + mean over the T*N triplets done in the wrapper.
    return (jnp.sum(partials[:, 0, 0]) / total_rows).astype(jnp.float32)


def _reference(embeddings, margin=0.2):
    T, B, D = embeddings.shape
    emb = embeddings.reshape(T, B // 3, 3, D)
    a, p, n = emb[:, :, 0], emb[:, :, 1], emb[:, :, 2]
    pos = jnp.sum((a - p) ** 2, axis=-1)
    neg = jnp.sum((a - n) ** 2, axis=-1)
    return jnp.mean(jnp.maximum(pos - neg + margin, 0.0))


if __name__ == "__main__":
    # Small shapes implied by the forward: seq T=8, batch=6 (divisible by 3), embed_dim=32.
    key = jax.random.PRNGKey(0)
    T, B, D = 8, 6, 32
    embeddings = jax.random.normal(key, (T, B, D), dtype=jnp.float32)

    loss = triplet_loss(embeddings, margin=0.2)
    loss = jax.block_until_ready(loss)

    ref = _reference(embeddings, margin=0.2)
    assert jnp.allclose(loss, ref, rtol=1e-4, atol=1e-4), (loss, ref)

    print("KERNEL_OK")
</pallas_src>

<mosaic_0001>
module attributes {stable_mosaic.version = 11 : i64} {
  func.func @_triplet_kernel(%arg0: i32, %arg1: memref<8x96xf32, #tpu.memory_space<vmem>>, %arg2: memref<1x8x128xf32, #tpu.memory_space<vmem>>) attributes {dimension_semantics = [#tpu.dimension_semantics<parallel>], iteration_bounds = array<i64: 2>, scalar_prefetch = 0 : i64, scratch_operands = 0 : i64, tpu.core_type = #tpu.core_type<tc>, window_params = [{transform_indices = @transform_0, window_bounds = array<i64: 8, 96>}, {transform_indices = @transform_1, window_bounds = array<i64: 1, 8, 128>}]} {
    %c0 = arith.constant 0 : index
    %c0_0 = arith.constant 0 : index
    %0 = vector.load %arg1[%c0, %c0_0] : memref<8x96xf32, #tpu.memory_space<vmem>>, vector<8x32xf32>
    %c0_1 = arith.constant 0 : index
    %c32 = arith.constant 32 : index
    %1 = vector.load %arg1[%c0_1, %c32] : memref<8x96xf32, #tpu.memory_space<vmem>>, vector<8x32xf32>
    %c0_2 = arith.constant 0 : index
    %c64 = arith.constant 64 : index
    %2 = vector.load %arg1[%c0_2, %c64] : memref<8x96xf32, #tpu.memory_space<vmem>>, vector<8x32xf32>
    %3 = arith.subf %0, %1 : vector<8x32xf32>
    %4 = arith.subf %0, %2 : vector<8x32xf32>
    %5 = arith.mulf %3, %3 : vector<8x32xf32>
    %6 = arith.mulf %4, %4 : vector<8x32xf32>
    %7 = arith.subf %5, %6 : vector<8x32xf32>
    %cst = arith.constant dense<0.000000e+00> : vector<8xf32>
    %8 = vector.multi_reduction <add>, %7, %cst [1] : vector<8x32xf32> to vector<8xf32>
    %9 = vector.shape_cast %8 : vector<8xf32> to vector<8x1xf32>
    %cst_3 = arith.constant 2.000000e-01 : f32
    %10 = vector.broadcast %cst_3 : f32 to vector<8x1xf32>
    %11 = arith.addf %9, %10 : vector<8x1xf32>
    %cst_4 = arith.constant 0.000000e+00 : f32
    %12 = vector.broadcast %cst_4 : f32 to vector<8x1xf32>
    %13 = arith.maximumf %11, %12 : vector<8x1xf32>
    %14 = vector.shape_cast %13 : vector<8x1xf32> to vector<1x8x1xf32>
    %cst_5 = arith.constant dense<0.000000e+00> : vector<1xf32>
    %15 = vector.multi_reduction <add>, %14, %cst_5 [1, 2] : vector<1x8x1xf32> to vector<1xf32>
    %16 = vector.shape_cast %15 : vector<1xf32> to vector<1x1x1xf32>
    %17 = vector.extract %16[0, 0, 0] : f32 from vector<1x1x1xf32>
    %18 = vector.broadcast %17 : f32 to vector<1x8x128xf32>
    %c0_6 = arith.constant 0 : index
    %c0_7 = arith.constant 0 : index
    %c0_8 = arith.constant 0 : index
    %19 = vector.load %arg2[%c0_6, %c0_7, %c0_8] : memref<1x8x128xf32, #tpu.memory_space<vmem>>, vector<1x8x128xf32>
    tpu.vector_store %arg2[%c0_6, %c0_7, %c0_8], %18 {strides = array<i32>} : memref<1x8x128xf32, #tpu.memory_space<vmem>>, vector<1x8x128xf32>,
    return
  }
  func.func @transform_0(%arg0: i32) -> (i32, i32) {
    %c0_i32 = arith.constant 0 : i32
    %c0_i32_0 = arith.constant 0 : i32
    return %arg0, %c0_i32 : i32, i32
  }
  func.func @transform_1(%arg0: i32) -> (i32, i32, i32) {
    %c0_i32 = arith.constant 0 : i32
    %c0_i32_0 = arith.constant 0 : i32
    %c0_i32_1 = arith.constant 0 : i32
    return %arg0, %c0_i32, %c0_i32_0 : i32, i32, i32
  }
}

</mosaic_0001>

<bundles_post_ra>
// kernel: tpu_custom_call.1
= control target key start
LH: loop header
LB: loop body
LE: loop exit
PB: predicated region body
PF: predicated region fallthrough
CT: control target
= control target key end

     0   :  { %6 = vsyncpa [#allocation3], 0  ;;  %s587_s0 = inlined_call_operand.hbm [shape: f32[16,96], index: 0, kind: input, shape index: {}]   ;;  %s588_s1 = inlined_call_operand.hbm [shape: f32[2,8,128], index: 1, kind: output, shape index: {}]  }
   0x1   :  { %8 = vsyncpa [#allocation3 + $0x1], 0 }
   0x2   :  { %9 = vsyncpa [#allocation4], 0 }
   0x3   :  { %11 = vsyncpa [#allocation4 + $0x1], 0  ;;  %s422_s6 = smov 0   ;;  %s424_s7 = smov 0  }
   0x4   :  { %s426_s8 = smov 0   ;;  %s428_s9 = smov 0  }
   0x5 LB: > { %s443_s10 = sadd.s32 4294967295, %s406_s9   ;;  %s248_s11 = sadd.s32 4294967294, %s406_s9   ;;  %s406_s9 = sphi %s428_s9, %s603_s9   ;;  %s402_s8 = sphi %s426_s8, %s602_s8   ;;  %s398_s7 = sphi %s424_s7, %s601_s7   ;;  %s394_s6 = sphi %s422_s6, %s600_s6  }
   0x6   : > { %s447_s12 = sadd.s32 1, %s406_s9   ;;  %s24_s13 = sadd.s32 1, %s402_s8 }
   0x7   : > { %s21_s14 = ssub.s32 %s406_s9, %s447_s12  ;;  %p31_p0 = scmp.ne.s32.totalorder %s402_s8, %s398_s7 }
   0x8   : > { %p22_p1 = scmp.eq.s32.totalorder %s21_s14, 0  ;;  %p32_p2 = scmp.eq.s32.totalorder %s406_s9, 0 }
   0x9   : > { %p37_p3 = scmp.ne.s32.totalorder %s398_s7, %s394_s6  ;;  %p38_p4 = scmp.eq.s32.totalorder %s443_s10, 0 }
   0xa   : > { %s459_s15 = scalar_select %p22_p1, %s402_s8, %s24_s13  }
   0xb   : > { %p461_p5 = por %p32_p2, %p31_p0  ;;  %p465_p6 = por %p38_p4, %p37_p3 }
   0xc   : > { %p61_p7 = scmp.eq.s32.totalorder %s443_s10, 1  ;;  %p67_p8 = scmp.eq.s32.totalorder %s248_s11, 1 }
   0xd   : > { %p274_p10 = scmp.lt.s32.totalorder %s406_s9, 2  ;;  %s87_s20 = sand.u32 1, %s402_s8  }
   0xe   : > { %p472_p11 = por %p61_p7, %p31_p0  ;;  %p476_p12 = por %p67_p8, %p37_p3 }
   0xf   : > { %s252_s21 = sshll.u32 %s406_s9, 7  ;;  %s251_s22 = sshll.u32 %s87_s20, 3 }
  0x10   : > { %s592_s18 = scalar_select %p472_p11, 1, 0 }
  0x11   : > { %s593_s19 = scalar_select %p476_p12, 1, 0 }
  0x12   : > { %s485_s25 = scalar_lea.hbm %s587_s0, %s252_s21  ;;  %s91_s26 = scalar_lea.vmem [#allocation2], %s251_s22 }
  0x13   : > { %s98_s27 = sshll.u32 %s91_s26, 4  ;;  %p489_p13 = pnand %p274_p10, %p461_p5  ;;  %s493_s27 = int_to_ptr.vmem [resolvable:$true] %s98_s27 }
  0x14   : > { %s88_s29 = scalar_lea.sflag [#allocation3], %s87_s20  ;;  %s310_s30 = scalar_lea.hbm %s485_s25, 128 }
  0x15   : > { %p311_p2 = scmp.ne.s32.totalorder %s485_s25, %s310_s30  ;;  %p312_p3 = pneg %p489_p13 }
  0x16   : > { %s315_s4 = scalar_lea.hbm %s587_s0, 256  ;;  %p316_p5 = scmp.lt.u32.totalorder %s485_s25, %s587_s0 }
  0x17   : > { %p313_p4 = pnand %p312_p3, %p311_p2  ;;  %p317_p8 = scmp.lt.u32.totalorder %s315_s4, %s310_s30 }
  0x18   : > { %p319_p9 = scmp.lt.u32.totalorder %s310_s30, %s485_s25 }
  0x19   : > { %p314_p7 = pneg %p313_p4  ;;  %p318_p10 = por %p317_p8, %p316_p5 }
  0x1b   : > { %p320_p0 = por %p319_p9, %p318_p10 }
  0x1d   : > { %p321_p1 = pnand %p320_p0, %p314_p7 }
  0x1f   : > { %324 = shalt.err (!%p321_p1)
}
  0x20   : > { %s325_s13 = scalar_lea.vmem %s493_s27, 128  ;;  %s408_s14 = smov [#allocation2]  }
  0x21   : > { %p326_p2 = scmp.ne.s32.totalorder %s493_s27, %s325_s13  ;;  %s330_s16 = sshll.u32 %s408_s14, 4  ;;  %s331_s16 = int_to_ptr.vmem [resolvable:$false] %s330_s16 }
  0x22   : > { %s332_s20 = scalar_lea.vmem %s331_s16, 256  ;;  %p333_p11 = scmp.lt.s32.totalorder %s493_s27, %s331_s16 }
  0x23   : > { %p328_p4 = pnand %p326_p2, %p312_p3  ;;  %p334_p5 = scmp.lt.s32.totalorder %s332_s20, %s325_s13 }
  0x25   : > { %p329_p12 = pneg %p328_p4  ;;  %p335_p8 = por %p334_p5, %p333_p11 }
  0x27   : > { %p336_p9 = pnand %p335_p8, %p329_p12 }
  0x29   : > { %339 = shalt.err (!%p336_p9)
}
  0x2a   : > { %269 = dma.hbm_to_vmem [thread:$0]  (!%p489_p13), %s485_s25, 128, %s493_s27, %s88_s29  }
  0x2b   : > { %p595_p0 = scmp.lt.s32.totalorder %s406_s9, 3  ;;  %p596_p1 = scmp.ge.s32.totalorder %s406_s9, 1 }
  0x2d   : > { %p104_p3 = pnand %p596_p1, %p595_p0 }
  0x2e   : > { %s527_s21 = sand.u32 (!%p104_p3), 1, %s398_s7  }
  0x2f   : > { %107 = sbr.rel (%p104_p3) target bundleno = 548 (0x224), region = 24  ;;  %s254_s22 = sshll.u32 (!%p104_p3), %s527_s21, 3 }
  0x30   : > { %s110_s23 = scalar_lea.sflag (!%p104_p3), [#allocation3], %s527_s21  ;;  %s113_s24 = scalar_lea.vmem (!%p104_p3), [#allocation2], %s254_s22 }
  0x36   : > { %385 = dma.done.wait (%p465_p6), %s110_s23, 128  }
  0x37   : > { %387 = vsyncadd (%p465_p6), %s110_s23, 4294967168  ;;  %v132_v0 = vld [vmem:[%s113_s24] sm:$0xff]  ;;  %s409_s25 = smov 96   ;;  %s410_s26 = smov 64   ;;  %vm145_vm0 = vcmask 261120   ;;  %vm151_vm1 = vcmask 7168  }
  0x38   : > { %134 = vrot.lane.b32.xlu0 %v132_v0, %s409_s25  ;;  %s131_s17 = scalar_lea.vmem [#allocation5], %s254_s22  ;;  %s257_s28 = sshll.u32 %s443_s10, 7 }
  0x39   : > { %s178_s27 = sshll.u32 %s131_s17, 4  ;;  %s545_s3 = scalar_lea.hbm %s588_s1, %s257_s28  ;;  %s540_s27 = int_to_ptr.vmem [resolvable:$true] %s178_s27 }
  0x3a   : > { %s165_s4 = scalar_lea.sflag [#allocation4], %s527_s21  ;;  %s340_s5 = scalar_lea.vmem %s540_s27, 128 }
  0x3b   : > { %p341_p6 = scmp.ne.s32.totalorder %s540_s27, %s340_s5  ;;  %p597_p11 = scmp.ne.s32.totalorder %s592_s18, 0 }
  0x3c   : > { %138 = vrot.lane.b32.xlu0 %v132_v0, %s410_s26  ;;  %s411_s10 = smov [#allocation5]  }
  0x3d   : > { %p342_p12 = pnand %p341_p6, %p597_p11  ;;  %s344_s11 = sshll.u32 %s411_s10, 4  ;;  %s345_s11 = int_to_ptr.vmem [resolvable:$false] %s344_s11 }
  0x3e   : > { %s346_s13 = scalar_lea.vmem %s345_s11, 256  ;;  %p347_p7 = scmp.lt.s32.totalorder %s540_s27, %s345_s11 }
  0x3f   : > { %p343_p13 = pneg %p342_p12  ;;  %p348_p10 = scmp.lt.s32.totalorder %s346_s13, %s340_s5 }
  0x41   : > { %p349_p2 = por %p348_p10, %p347_p7 }
  0x43   : > { %p350_p4 = pnand %p349_p2, %p343_p13 }
  0xaa   : > { %v135_v1 = vpop.permute.xlu0 %134 }
  0xab   : > { %v137_v2 = vsub.f32 %v132_v0, %v135_v1 }
  0xad   : > { %v142_v5 = vmul.f32 %v137_v2, %v137_v2 }
  0xae   : > { %v139_v3 = vpop.permute.xlu0 %138 }
  0xaf   : > { %v141_v4 = vsub.f32 %v132_v0, %v139_v3 }
  0xb1   : > { %v143_v6 = vmul.f32 %v141_v4, %v141_v4 }
  0xb3   : > { %v144_v7 = vsub.f32 %v142_v5, %v143_v6 }
  0xb5   : > { %v146_v8 = vsel %vm145_vm0, %v144_v7, 0.0 }
  0xb6   : > { %147 = vadd.xlane.f32.xlu1 %v146_v8 }
 0x143   : > { %v148_v9 = vpop.xlane.xlu1 %147 }
 0x144   : > { %v149_v10 = vadd.f32 0.2, %v148_v9 }
 0x146   : > { %v150_v11 = vmax.f32 %v149_v10, 0.0 }
 0x148   : > { %v152_v12 = vsel %vm151_vm1, %v150_v11, 0.0 }
 0x149   : > { %153 = vadd.xlane.f32.xlu1 %v152_v12 }
 0x1d6   : > { %v154_v13 = vpop.xlane.xlu1 %153 }
 0x1d7   : > { %v155_v14 = vrot.slane %v154_v13, 4 }
 0x1d9   : > { %v156_v15 = vadd.f32 %v155_v14, %v154_v13 }
 0x1db   : > { %v157_v16 = vrot.slane %v156_v15, 2 }
 0x1dd   : > { %v158_v17 = vadd.f32 %v157_v16, %v156_v15 }
 0x1df   : > { %v159_v18 = vrot.slane %v158_v17, 1 }
 0x1e1   : > { %v160_v19 = vadd.f32 %v159_v18, %v158_v17 }
 0x1e3   : > { %260 = vpush %v160_v19 }
 0x214   : > { %s261_s29 = spop %260 }
 0x215   : > { %v162_v20 = vstv %s261_s29 }
 0x216   : > { %163 = vst [vmem:[%s131_s17] sm:$0xff] %v162_v20 }
 0x217   : > { %353 = shalt.err (!%p350_p4)
}
 0x218   : > { %s354_s14 = scalar_lea.hbm %s545_s3, 128  ;;  %s358_s21 = scalar_lea.hbm %s588_s1, 256 }
 0x219   : > { %p355_p5 = scmp.ne.s32.totalorder %s545_s3, %s354_s14  ;;  %p359_p0 = scmp.lt.u32.totalorder %s545_s3, %s588_s1 }
 0x21a   : > { %p360_p1 = scmp.lt.u32.totalorder %s358_s21, %s354_s14  ;;  %p362_p6 = scmp.lt.u32.totalorder %s354_s14, %s545_s3 }
 0x21b   : > { %p356_p8 = pnand %p355_p5, %p597_p11 }
 0x21c   : > { %p361_p3 = por %p360_p1, %p359_p0 }
 0x21d   : > { %p357_p9 = pneg %p356_p8 }
 0x21e   : > { %p363_p12 = por %p362_p6, %p361_p3 }
 0x220   : > { %p364_p13 = pnand %p363_p12, %p357_p9 }
 0x222   : > { %367 = shalt.err (!%p364_p13)
}
 0x223   : > { %264 = dma.vmem_to_hbm [thread:$0]  (%p597_p11), %s540_s27, 128, %s545_s3, %s165_s4  }
 0x224 PF: > { %s190_s24 = sand.u32 1, %s394_s6   ;;  %p598_p7 = scmp.ne.s32.totalorder %s593_s19, 0 }
 0x225   : > { %p599_p10 = scmp.ge.s32.totalorder %s406_s9, 2  ;;  %s191_s25 = scalar_lea.sflag [#allocation4], %s190_s24 }
 0x227   : > { %p271_p2 = pnand %p599_p10, %p598_p7 }
 0x229   : > { %389 = dma.done.wait (!%p271_p2), %s191_s25, 128  }
 0x22a   : > { %391 = vsyncadd (!%p271_p2), %s191_s25, 4294967168  ;;  %p14_p4 = scmp.ge.s32.totalorder %s447_s12, 4   ;;  %s600_s6 = smov %s398_s7 }
 0x22b   : > { %s601_s7 = smov %s402_s8  ;;  %s602_s8 = smov %s459_s15 }
 0x22c   : > { %s603_s9 = smov %s447_s12  ;;  %16 = sbr.rel (!%p14_p4) target bundleno = 5 (0x5), region = 69 }
 0x233   :  { %196 = vsyncpa [#allocation3], 1 }
 0x234   :  { %198 = vsyncpa [#allocation3 + $0x1], 1 }
 0x235   :  { %199 = vsyncpa [#allocation4], 1 }
 0x236   :  { %201 = vsyncpa [#allocation4 + $0x1], 1 }

</bundles_post_ra>
